<compile_context>
chip_gen: v7x
topology: tpu7x:2x2x1
jax: 0.10.0
libtpu: 0.0.40
codegen_flags: <defaults>
</compile_context>

<pallas_src>
import jax
import jax.numpy as jnp
from jax.experimental import pallas as pl
from jax.experimental.pallas import tpu as pltpu


# ----------------------------- Pallas kernel --------------------------------

def grouped_moe_kernel(te_ref, ta_ref, xs_ref, w13_ref, w2_ref, ys_ref, acc_ref):
    """grid = (slot_tile t ["parallel"], intermediate tile f ["arbitrary"])."""
    t = pl.program_id(0)
    f = pl.program_id(1)
    n_f = pl.num_programs(1)

    @pl.when(f == 0)
    def _init():
        acc_ref[...] = jnp.zeros_like(acc_ref)

    # Padding-tail tiles do no compute; their weight/activation DMAs are also
    # elided by the clamped index_maps in grouped_moe_apply (empty experts are
    # never even visited — they own zero tiles).
    @pl.when(ta_ref[t] > 0)
    def _compute():
        x = xs_ref[...]                                     # (TN, H)  stored dtype
        w13 = w13_ref[...]                                  # (H, 2*TF) fused [w1 | w3]
        h = jnp.dot(x, w13, preferred_element_type=jnp.float32)     # (TN, 2*TF) f32
        tf = h.shape[-1] // 2
        h1 = h[:, :tf]                                      # gate proj (w1)
        h3 = h[:, tf:]                                      # up proj   (w3)
        g = (h1 * jax.nn.sigmoid(h1)) * h3                  # SwiGLU in f32
        acc_ref[...] += jnp.dot(g.astype(w2_ref.dtype), w2_ref[...],
                                preferred_element_type=jnp.float32)

    @pl.when(f == n_f - 1)
    def _fin():
        ys_ref[...] = acc_ref[...].astype(ys_ref.dtype)


# ------------------------ generation-aware tiling ----------------------------

def _cdiv(a, b):
    return -(-a // b)


def _round_up(a, m):
    return _cdiv(a, m) * m


def _vmem_capacity_bytes():
    try:
        info = pltpu.get_tpu_info()
        for attr in ("vmem_capacity_bytes", "vmem_bytes", "vmem_size_bytes"):
            v = getattr(info, attr, None)
            if v:
                return int(v)
    except Exception:
        pass
    return 64 * 1024 * 1024   # conservative: assume a 64 MiB-VMEM part (v7x)


def _generation_caps():
    """(tn_cap, tf_cap, vmem_limit_bytes) sized to the part's VMEM capacity."""
    if _vmem_capacity_bytes() >= 128 * 1024 * 1024:      # v5e / v6e (128 MiB)
        return 512, 1024, 100 * 1024 * 1024
    return 256, 512, 48 * 1024 * 1024                    # v7x (64 MiB)


def suggest_tf(ffn_dim):
    """Largest 128-aligned tile of the intermediate dim within the VMEM budget."""
    _, tf_cap, _ = _generation_caps()
    if ffn_dim <= tf_cap:
        return ffn_dim
    for cand in range(tf_cap, 127, -128):
        if ffn_dim % cand == 0:
            return cand
    # TODO(synk): pad the intermediate dim instead of refusing awkward sizes.
    raise ValueError(f"intermediate_size={ffn_dim} has no 128-aligned tile <= {tf_cap}")


def suggest_tn(n_slots, dtype):
    """Token (slot) tile: packed-dtype sublane aligned, as large as the part allows."""
    tn_cap, _, _ = _generation_caps()
    sub = 8 * max(1, 4 // jnp.dtype(dtype).itemsize)     # f32:8, bf16:16, int8/fp8:32
    return max(sub, min(tn_cap, _round_up(n_slots, sub)))


# ------------------------------ weight prep ----------------------------------

def prepare_moe_params(wg, w1, w3, w2, tf):
    """One-time relayout of torch nn.Linear weights into kernel layout.

    wg: (E, H)  gate;  w1, w3: (E, F, H)  gate/up proj;  w2: (E, H, F)  down proj.
    w1/w3 are fused per TF-tile into (E, n_f, H, 2*TF) so the kernel does one
    up-projection dot and one weight DMA stream per step.
    """
    E, F, H = w1.shape
    assert F % tf == 0, (F, tf)
    n_f = F // tf
    w1_t = jnp.transpose(w1, (0, 2, 1))                              # (E, H, F)
    w3_t = jnp.transpose(w3, (0, 2, 1))                              # (E, H, F)
    w13 = jnp.concatenate([w1_t.reshape(E, H, n_f, tf),
                           w3_t.reshape(E, H, n_f, tf)], axis=-1)    # (E, H, n_f, 2tf)
    return {
        "wg_t": jnp.transpose(wg),                                   # (H, E)
        "w13": jnp.transpose(w13, (0, 2, 1, 3)),                     # (E, n_f, H, 2tf)
        "w2": jnp.transpose(w2, (0, 2, 1)),                          # (E, F, H)
        "tf": tf,
    }


# ------------------------------ grouped GEMM ----------------------------------

def grouped_moe_apply(xs, w13, w2, tile_expert, tile_active, *, vmem_limit):
    """xs: (S_buf, H) expert-sorted, tile-aligned slots; returns ys: (S_buf, H)."""
    S_buf, H = xs.shape
    E, n_f, _, tf2 = w13.shape
    tf = tf2 // 2
    assert w2.shape == (E, n_f * tf, H)
    num_tiles = tile_expert.shape[0]
    assert S_buf % num_tiles == 0
    tn = S_buf // num_tiles

    # Active tiles fetch their own expert's weight tiles; inactive (tail) tiles
    # clamp both the expert and the f index to the previously fetched block, so
    # Pallas elides their weight DMAs entirely.  xs for inactive tiles is
    # clamped to tile 0 (re-fetched at most once).
    xs_map = lambda t, f, te, ta: (jnp.where(ta[t] > 0, t, 0), 0)
    w13_map = lambda t, f, te, ta: (te[t], jnp.where(ta[t] > 0, f, n_f - 1), 0, 0)
    w2_map = lambda t, f, te, ta: (te[t], jnp.where(ta[t] > 0, f, n_f - 1), 0)
    ys_map = lambda t, f, te, ta: (t, 0)

    return pl.pallas_call(
        grouped_moe_kernel,
        out_shape=jax.ShapeDtypeStruct((S_buf, H), xs.dtype),
        grid_spec=pltpu.PrefetchScalarGridSpec(
            num_scalar_prefetch=2,                    # tile_expert, tile_active -> SMEM
            grid=(num_tiles, n_f),
            in_specs=[
                pl.BlockSpec((tn, H), xs_map),                      # sorted activations
                pl.BlockSpec((None, None, H, 2 * tf), w13_map),     # fused w1|w3 tile
                pl.BlockSpec((None, tf, H), w2_map),                # down-proj tile
            ],
            out_specs=pl.BlockSpec((tn, H), ys_map),
            scratch_shapes=[pltpu.VMEM((tn, H), jnp.float32)],      # f32 accumulator
        ),
        compiler_params=pltpu.CompilerParams(
            dimension_semantics=("parallel", "arbitrary"),
            vmem_limit_bytes=vmem_limit,
        ),
    )(tile_expert, tile_active, xs, w13, w2)


# ------------------------------- forward --------------------------------------

def token_topk_moe(x, params, top_k, *, tn=None):
    """Forward pass equivalent to TokenTopKMoeBlock.forward (full capacity)."""
    B, S, H = x.shape
    N = B * S
    k = top_k
    x2d = x.reshape(N, H)

    w13, w2, tf = params["w13"], params["w2"], params["tf"]
    E = w13.shape[0]

    # ---- routing (tiny; left to XLA) ----
    router_logits = jnp.dot(x2d, params["wg_t"],
                            preferred_element_type=jnp.float32)       # (N, E) f32
    probs = jax.nn.softmax(router_logits, axis=-1)
    top_w, top_idx = jax.lax.top_k(probs, k)                          # (N, k)
    top_w = top_w / jnp.sum(top_w, axis=-1, keepdims=True)            # f32

    # ---- grouped-dispatch metadata (all static shapes) ----
    _, _, vmem_limit = _generation_caps()
    if tn is None:
        tn = suggest_tn(N * k, x.dtype)
    num_tiles = _cdiv(N * k, tn) + E        # static worst case incl. per-group padding
    S_buf = num_tiles * tn

    flat_e = top_idx.reshape(-1).astype(jnp.int32)                    # (N*k,)
    flat_t = jnp.repeat(jnp.arange(N, dtype=jnp.int32), k)            # (N*k,)
    order = jnp.argsort(flat_e)                                       # sort slots by expert
    sort_e = flat_e[order]
    sort_t = flat_t[order]

    counts = jnp.bincount(flat_e, length=E).astype(jnp.int32)         # (E,)
    padded = ((counts + tn - 1) // tn) * tn                           # tile-aligned group sizes
    gstart_pad = jnp.concatenate([jnp.zeros((1,), jnp.int32),
                                  jnp.cumsum(padded)[:-1].astype(jnp.int32)])
    gstart_dat = jnp.concatenate([jnp.zeros((1,), jnp.int32),
                                  jnp.cumsum(counts)[:-1].astype(jnp.int32)])
    rank = jnp.arange(N * k, dtype=jnp.int32) - gstart_dat[sort_e]
    dest = gstart_pad[sort_e] + rank                                  # slot -> buffer row

    # per-tile metadata (scalar-prefetched)
    tstart = jnp.arange(num_tiles, dtype=jnp.int32) * tn
    gend_pad = gstart_pad + padded
    in_grp = (tstart[:, None] >= gstart_pad[None, :]) & (tstart[:, None] < gend_pad[None, :])
    n_active = (jnp.sum(padded) // tn).astype(jnp.int32)
    tile_active = (jnp.arange(num_tiles, dtype=jnp.int32) < n_active).astype(jnp.int32)
    texp_raw = jnp.argmax(in_grp, axis=1).astype(jnp.int32)
    last_e = texp_raw[jnp.maximum(n_active - 1, 0)]
    tile_expert = jnp.where(tile_active > 0, texp_raw, last_e)        # clamp tail -> no re-DMA

    # scatter tokens into the expert-sorted, tile-aligned slot buffer
    xs = jnp.zeros((S_buf, H), x2d.dtype).at[dest].set(x2d[sort_t])

    # ---- grouped expert GEMM (Pallas) ----
    ys = grouped_moe_apply(xs, w13, w2, tile_expert, tile_active, vmem_limit=vmem_limit)

    # ---- unsort + weighted combine (routing weights applied in f32) ----
    pos = jnp.zeros((N * k,), jnp.int32).at[order].set(dest)          # flat slot -> buffer row
    expert_out = ys[pos].reshape(N, k, H).astype(jnp.float32)
    out2d = jnp.einsum("nk,nkh->nh", top_w, expert_out).astype(x.dtype)

    final_hidden_states = out2d.reshape(B, S, H)
    router_out = router_logits.reshape(B, S, E).mean(axis=1)          # (B, E), as in torch
    return final_hidden_states, router_out


# ------------------------------ reference -------------------------------------

def ref_token_topk_moe(x, wg, w1, w3, w2, top_k):
    B, S, H = x.shape
    x2d = x.reshape(-1, H)
    logits = jnp.dot(x2d, wg.T, preferred_element_type=jnp.float32)
    E = logits.shape[-1]
    probs = jax.nn.softmax(logits, axis=-1)
    top_w, top_idx = jax.lax.top_k(probs, top_k)
    top_w = top_w / jnp.sum(top_w, axis=-1, keepdims=True)
    onehot = jax.nn.one_hot(top_idx, E, dtype=jnp.float32)
    dense_w = jnp.einsum("nk,nke->ne", top_w, onehot)                 # (N, E)
    out = jnp.zeros_like(x2d)
    for e in range(E):
        h1 = x2d @ w1[e].T
        h3 = x2d @ w3[e].T
        y = ((h1 * jax.nn.sigmoid(h1)) * h3) @ w2[e].T
        out = out + dense_w[:, e:e + 1] * y
    return out.reshape(B, S, H), logits.reshape(B, S, E).mean(axis=1)


# --------------------------------- main ----------------------------------------

if __name__ == "__main__":
    B, S, H, F, E, TOPK = 2, 8, 32, 256, 4, 2

    key = jax.random.PRNGKey(0)
    k_wg, k_w1, k_w3, k_w2, k_x = jax.random.split(key, 5)

    # torch nn.Linear weights are (out, in).
    wg = jax.random.normal(k_wg, (E, H), jnp.float32) * 0.05          # gate
    w1 = jax.random.normal(k_w1, (E, F, H), jnp.float32) * 0.05       # gate proj
    w3 = jax.random.normal(k_w3, (E, F, H), jnp.float32) * 0.05       # up proj
    w2 = jax.random.normal(k_w2, (E, H, F), jnp.float32) * 0.05       # down proj
    x = jax.random.normal(k_x, (B, S, H), jnp.float32)

    # tf=128 / tn=8 exercise the full grouped grid (several slot tiles per
    # expert, multiple F tiles, a DMA-elided padding tail) at this toy size.
    # At real sizes the generation-aware defaults pick tn<=512 / tf<=1024 on
    # 128 MiB parts (v5e/v6e) and tn<=256 / tf<=512 on v7x (64 MiB VMEM).
    params = prepare_moe_params(wg, w1, w3, w2, tf=128)
    final, router = token_topk_moe(x, params, TOPK, tn=8)
    jax.block_until_ready((final, router))

    ref_final, ref_router = ref_token_topk_moe(x, wg, w1, w3, w2, TOPK)
    assert final.shape == (B, S, H) and router.shape == (B, E)
    assert jnp.allclose(final, ref_final, atol=2e-4, rtol=2e-4), \
        float(jnp.max(jnp.abs(final - ref_final)))
    assert jnp.allclose(router, ref_router, atol=1e-4, rtol=1e-4), \
        float(jnp.max(jnp.abs(router - ref_router)))

    print("KERNEL_OK")
</pallas_src>

<mosaic_0001>
module attributes {stable_mosaic.version = 11 : i64} {
  func.func @grouped_moe_kernel(%arg0: i32, %arg1: i32, %arg2: memref<8xi32, #tpu.memory_space<smem>>, %arg3: memref<8xi32, #tpu.memory_space<smem>>, %arg4: memref<8x32xf32, #tpu.memory_space<vmem>>, %arg5: memref<1x1x32x256xf32, #tpu.memory_space<vmem>>, %arg6: memref<1x128x32xf32, #tpu.memory_space<vmem>>, %arg7: memref<8x32xf32, #tpu.memory_space<vmem>>, %arg8: memref<8x32xf32, #tpu.memory_space<vmem>>) attributes {dimension_semantics = [#tpu.dimension_semantics<parallel>, #tpu.dimension_semantics<arbitrary>], iteration_bounds = array<i64: 8, 2>, scalar_prefetch = 2 : i64, scratch_operands = 1 : i64, tpu.core_type = #tpu.core_type<tc>, window_params = [{transform_indices = @transform_0, window_bounds = array<i64: 8, 32>}, {transform_indices = @transform_1, window_bounds = array<i64: 1, 1, 32, 256>}, {transform_indices = @transform_2, window_bounds = array<i64: 1, 128, 32>}, {transform_indices = @transform_3, window_bounds = array<i64: 8, 32>}]} {
    %c0_i32 = arith.constant 0 : i32
    %0 = arith.cmpi eq, %arg1, %c0_i32 : i32
    %1 = arith.extui %0 : i1 to i32
    %c0_i32_0 = arith.constant 0 : i32
    %2 = arith.cmpi ne, %1, %c0_i32_0 : i32
    scf.if %2 {
      %cst = arith.constant 0.000000e+00 : f32
      %11 = vector.broadcast %cst : f32 to vector<8x32xf32>
      %c0 = arith.constant 0 : index
      %c0_4 = arith.constant 0 : index
      %12 = vector.load %arg8[%c0, %c0_4] : memref<8x32xf32, #tpu.memory_space<vmem>>, vector<8x32xf32>
      tpu.vector_store %arg8[%c0, %c0_4], %11 {strides = array<i32>} : memref<8x32xf32, #tpu.memory_space<vmem>>, vector<8x32xf32>,
    } else {
    }
    %3 = arith.index_cast %arg0 : i32 to index
    %4 = memref.load %arg3[%3] : memref<8xi32, #tpu.memory_space<smem>>
    %c0_i32_1 = arith.constant 0 : i32
    %5 = arith.cmpi sgt, %4, %c0_i32_1 : i32
    %6 = arith.extui %5 : i1 to i32
    %c0_i32_2 = arith.constant 0 : i32
    %7 = arith.cmpi ne, %6, %c0_i32_2 : i32
    scf.if %7 {
      %c0 = arith.constant 0 : index
      %c0_4 = arith.constant 0 : index
      %11 = vector.load %arg4[%c0, %c0_4] : memref<8x32xf32, #tpu.memory_space<vmem>>, vector<8x32xf32>
      %c0_5 = arith.constant 0 : index
      %c0_6 = arith.constant 0 : index
      %c0_7 = arith.constant 0 : index
      %c0_8 = arith.constant 0 : index
      %12 = vector.load %arg5[%c0_5, %c0_6, %c0_7, %c0_8] : memref<1x1x32x256xf32, #tpu.memory_space<vmem>>, vector<1x1x32x256xf32>
      %13 = vector.shape_cast %12 : vector<1x1x32x256xf32> to vector<32x256xf32>
      %cst = arith.constant dense<0.000000e+00> : vector<8x256xf32>
      %14 = tpu.matmul %11, %13, %cst {dimension_numbers = #tpu.dot_dimension_numbers<[1], [0], [0], [1], [0, 0, 1, 1], [], []>} : vector<8x32xf32>, vector<32x256xf32>, vector<8x256xf32> -> vector<8x256xf32>
      %15 = vector.extract_strided_slice %14 {offsets = [0, 0], sizes = [8, 128], strides = [1, 1]} : vector<8x256xf32> to vector<8x128xf32>
      %16 = vector.extract_strided_slice %14 {offsets = [0, 128], sizes = [8, 128], strides = [1, 1]} : vector<8x256xf32> to vector<8x128xf32>
      %17 = arith.negf %15 : vector<8x128xf32>
      %18 = math.exp %17 : vector<8x128xf32>
      %cst_9 = arith.constant 1.000000e+00 : f32
      %19 = vector.broadcast %cst_9 : f32 to vector<8x128xf32>
      %20 = arith.addf %19, %18 : vector<8x128xf32>
      %21 = arith.divf %19, %20 : vector<8x128xf32>
      %22 = arith.mulf %15, %21 : vector<8x128xf32>
      %23 = arith.mulf %22, %16 : vector<8x128xf32>
      %c0_10 = arith.constant 0 : index
      %c0_11 = arith.constant 0 : index
      %24 = vector.load %arg8[%c0_10, %c0_11] : memref<8x32xf32, #tpu.memory_space<vmem>>, vector<8x32xf32>
      %c0_12 = arith.constant 0 : index
      %c0_13 = arith.constant 0 : index
      %c0_14 = arith.constant 0 : index
      %25 = vector.load %arg6[%c0_12, %c0_13, %c0_14] : memref<1x128x32xf32, #tpu.memory_space<vmem>>, vector<1x128x32xf32>
      %26 = vector.shape_cast %25 : vector<1x128x32xf32> to vector<128x32xf32>
      %cst_15 = arith.constant dense<0.000000e+00> : vector<8x32xf32>
      %27 = tpu.matmul %23, %26, %cst_15 {dimension_numbers = #tpu.dot_dimension_numbers<[1], [0], [0], [1], [0, 0, 1, 1], [], []>} : vector<8x128xf32>, vector<128x32xf32>, vector<8x32xf32> -> vector<8x32xf32>
      %28 = arith.addf %24, %27 : vector<8x32xf32>
      %c0_16 = arith.constant 0 : index
      %c0_17 = arith.constant 0 : index
      %29 = vector.load %arg8[%c0_16, %c0_17] : memref<8x32xf32, #tpu.memory_space<vmem>>, vector<8x32xf32>
      tpu.vector_store %arg8[%c0_16, %c0_17], %28 {strides = array<i32>} : memref<8x32xf32, #tpu.memory_space<vmem>>, vector<8x32xf32>,
    } else {
    }
    %c1_i32 = arith.constant 1 : i32
    %8 = arith.cmpi eq, %arg1, %c1_i32 : i32
    %9 = arith.extui %8 : i1 to i32
    %c0_i32_3 = arith.constant 0 : i32
    %10 = arith.cmpi ne, %9, %c0_i32_3 : i32
    scf.if %10 {
      %c0 = arith.constant 0 : index
      %c0_4 = arith.constant 0 : index
      %11 = vector.load %arg8[%c0, %c0_4] : memref<8x32xf32, #tpu.memory_space<vmem>>, vector<8x32xf32>
      %c0_5 = arith.constant 0 : index
      %c0_6 = arith.constant 0 : index
      %12 = vector.load %arg7[%c0_5, %c0_6] : memref<8x32xf32, #tpu.memory_space<vmem>>, vector<8x32xf32>
      tpu.vector_store %arg7[%c0_5, %c0_6], %11 {strides = array<i32>} : memref<8x32xf32, #tpu.memory_space<vmem>>, vector<8x32xf32>,
    } else {
    }
    return
  }
  func.func @transform_0(%arg0: i32, %arg1: i32, %arg2: memref<8xi32, #tpu.memory_space<smem>>, %arg3: memref<8xi32, #tpu.memory_space<smem>>) -> (i32, i32) {
    %0 = arith.index_cast %arg0 : i32 to index
    %1 = memref.load %arg3[%0] : memref<8xi32, #tpu.memory_space<smem>>
    %c0_i32 = arith.constant 0 : i32
    %2 = arith.cmpi sgt, %1, %c0_i32 : i32
    %c0_i32_0 = arith.constant 0 : i32
    %3 = arith.select %2, %arg0, %c0_i32_0 : i32
    %c0_i32_1 = arith.constant 0 : i32
    %c0_i32_2 = arith.constant 0 : i32
    return %3, %c0_i32_1 : i32, i32
  }
  func.func @transform_1(%arg0: i32, %arg1: i32, %arg2: memref<8xi32, #tpu.memory_space<smem>>, %arg3: memref<8xi32, #tpu.memory_space<smem>>) -> (i32, i32, i32, i32) {
    %0 = arith.index_cast %arg0 : i32 to index
    %1 = memref.load %arg2[%0] : memref<8xi32, #tpu.memory_space<smem>>
    %2 = arith.index_cast %arg0 : i32 to index
    %3 = memref.load %arg3[%2] : memref<8xi32, #tpu.memory_space<smem>>
    %c0_i32 = arith.constant 0 : i32
    %4 = arith.cmpi sgt, %3, %c0_i32 : i32
    %c1_i32 = arith.constant 1 : i32
    %5 = arith.select %4, %arg1, %c1_i32 : i32
    %c0_i32_0 = arith.constant 0 : i32
    %c0_i32_1 = arith.constant 0 : i32
    %c0_i32_2 = arith.constant 0 : i32
    return %1, %5, %c0_i32_0, %c0_i32_1 : i32, i32, i32, i32
  }
  func.func @transform_2(%arg0: i32, %arg1: i32, %arg2: memref<8xi32, #tpu.memory_space<smem>>, %arg3: memref<8xi32, #tpu.memory_space<smem>>) -> (i32, i32, i32) {
    %0 = arith.index_cast %arg0 : i32 to index
    %1 = memref.load %arg2[%0] : memref<8xi32, #tpu.memory_space<smem>>
    %2 = arith.index_cast %arg0 : i32 to index
    %3 = memref.load %arg3[%2] : memref<8xi32, #tpu.memory_space<smem>>
    %c0_i32 = arith.constant 0 : i32
    %4 = arith.cmpi sgt, %3, %c0_i32 : i32
    %c1_i32 = arith.constant 1 : i32
    %5 = arith.select %4, %arg1, %c1_i32 : i32
    %c0_i32_0 = arith.constant 0 : i32
    %c0_i32_1 = arith.constant 0 : i32
    return %1, %5, %c0_i32_0 : i32, i32, i32
  }
  func.func @transform_3(%arg0: i32, %arg1: i32, %arg2: memref<8xi32, #tpu.memory_space<smem>>, %arg3: memref<8xi32, #tpu.memory_space<smem>>) -> (i32, i32) {
    %c0_i32 = arith.constant 0 : i32
    %c0_i32_0 = arith.constant 0 : i32
    return %arg0, %c0_i32 : i32, i32
  }
}

</mosaic_0001>

<bundles_post_ra>
// kernel: tpu_custom_call.1
= control target key start
LH: loop header
LB: loop body
LE: loop exit
PB: predicated region body
PF: predicated region fallthrough
CT: control target
= control target key end

     0   :  { %s1001_s0 = inlined_call_operand.vmem [shape: s32[8], index: 0, kind: input, shape index: {}]   ;;  %s1002_s2 = inlined_call_operand.vmem [shape: f32[64,32], index: 2, kind: input, shape index: {}]   ;;  %s1003_s3 = inlined_call_operand.vmem [shape: f32[4,2,32,256], index: 3, kind: input, shape index: {}]   ;;  %s1004_s4 = inlined_call_operand.vmem [shape: f32[4,256,32], index: 4, kind: input, shape index: {}]   ;;  %s1005_s5 = inlined_call_operand.vmem [shape: f32[64,32], index: 5, kind: output, shape index: {}]   ;;  %s1006_s1 = inlined_call_operand.vmem [shape: s32[8], index: 1, kind: input, shape index: {}]  }
   0x1   :  { %s10_s20 = sshll.u32 %s1001_s0, 4  ;;  %s14_s23 = sshll.u32 %s1006_s1, 4  ;;  %s11_s20 = int_to_ptr.vmem [resolvable:$true] %s10_s20  ;;  %s15_s23 = int_to_ptr.vmem [resolvable:$true] %s14_s23 }
   0x2   :  { %s793_s24 = scalar_lea.vmem %s11_s20, 16  ;;  %p798_p1 = scmp.lt.s32.totalorder %s11_s20, %s11_s20 }
   0x3   :  { %p794_p0 = scmp.ne.s32.totalorder %s11_s20, %s793_s24  ;;  %p799_p2 = scmp.lt.s32.totalorder %s793_s24, %s793_s24 }
   0x5   :  { %p800_p3 = por %p799_p2, %p798_p1 }
   0x7   :  { %p801_p4 = pnand %p800_p3, %p794_p0 }
   0x9   :  { %804 = shalt.err (!%p801_p4)  }
   0xa   :  { %s859_s25 = smov [#allocation4]   ;;  %s805_s26 = scalar_lea.vmem %s15_s23, 16 }
   0xb   :  { %13 = dma.vmem_to_smem %s11_s20, 16, %s859_s25, [#allocation3] }
   0xc   :  { %p806_p5 = scmp.ne.s32.totalorder %s15_s23, %s805_s26  ;;  %p810_p6 = scmp.lt.s32.totalorder %s15_s23, %s15_s23 }
   0xd   :  { %p811_p7 = scmp.lt.s32.totalorder %s805_s26, %s805_s26 }
   0xf   :  { %p812_p8 = por %p811_p7, %p810_p6 }
  0x11   :  { %p813_p9 = pnand %p812_p8, %p806_p5 }
  0x13   :  { %816 = shalt.err (!%p813_p9)  }
  0x14   :  { %s860_s0 = smov [#allocation5]  }
  0x15   :  { %17 = dma.vmem_to_smem %s15_s23, 16, %s860_s0, [#allocation3] }
  0x16   :  { %837 = dma.done.wait [#allocation3], 32 }
  0x17   :  { %838 = vsyncadd [#allocation3], 4294967264 }
  0x18   :  { %19 = sfence }
  0x19   :  { %s901_s1 = smov 0   ;;  %s903_s27 = smov 0  }
  0x1a   :  { %s905_s28 = smov 0   ;;  %s907_s29 = smov 0  }
  0x1b   :  { %s909_s30 = smov 0  }
  0x1c LB: > { %s34_s6 = sadd.s32 1, %s849_s28  ;;  %s37_s7 = sadd.s32 1, %s853_s29  ;;  %s857_s30 = sphi %s909_s30, %s25_s30   ;;  %s853_s29 = sphi %s907_s29, %s1010_s29   ;;  %s849_s28 = sphi %s905_s28, %s1009_s28   ;;  %s845_s27 = sphi %s903_s27, %s1008_s27   ;;  %s841_s1 = sphi %s901_s1, %s1007_s1  }
  0x1d   : > { %p35_p10 = scmp.ge.s32.totalorder %s34_s6, 2  ;;  %p643_p11 = scmp.ge.s32.totalorder %s857_s30, 1 }
  0x1e   : > { %p237_p12 = scmp.lt.s32.totalorder %s857_s30, 17 }
  0x1f   : > { %s1012_s6 = smov (%p35_p10, %s34_s6), 0  ;;  %s1014_s7 = smov (!%p35_p10, %s37_s7), %s853_s29 }
  0x20   : > { %p238_p13 = pnand %p643_p11, %p237_p12  ;;  %p39_p0 = scmp.ge.s32.totalorder %s1014_s7, 8 }
  0x21   : > { %s288_s8 = sld [smem:[#allocation5 + %s845_s27]] (!%p238_p13)  ;;  %p333_p1 = scmp.lt.s32.totalorder (!%p238_p13), %s845_s27, 7 }
  0x22   : > { %s1016_s7 = smov (%p39_p0, %s1014_s7), 0  ;;  %241 = sbr.rel (%p238_p13) target bundleno = 547 (0x223), region = 32 }
  0x23   : > { %s298_s9 = sld [smem:[#allocation4 + %s845_s27]] (!%p238_p13)  ;;  %p652_p10 = scmp.ne.s32.totalorder (!%p238_p13), %s841_s1, 0 }
  0x24   : > { %s299_s10 = sld [smem:[#allocation5 + %s845_s27]] (!%p238_p13) }
  0x25   : > { %s316_s11 = sld [smem:[#allocation5 + %s845_s27]] (!%p238_p13) }
  0x26   : > { %s315_s13 = sld [smem:[#allocation4 + %s845_s27]] (!%p238_p13) }
  0x27   : > { %p289_p2 = scmp.gt.s32.totalorder (!%p238_p13), %s288_s8, 0 }
  0x29   : > { %s334_s12 = scalar_select %p333_p1, %s845_s27, 7 }
  0x2a   : > { %p300_p3 = scmp.gt.s32.totalorder %s299_s10, 0  ;;  %p302_p4 = scmp.lt.s32.totalorder %s298_s9, 3  ;;  %vm341_vm0 = vcmask (!%p652_p10), 261120   ;;  %v861_v0 = vmov (!%p652_p10), 0.0  }
  0x2b   : > { %s290_s14 = scalar_select %p289_p2, %s845_s27, 0 }
  0x2c   : > { %s301_s15 = scalar_select %p300_p3, %s841_s1, 1 }
  0x2d   : > { %p291_p5 = scmp.lt.s32.totalorder %s290_s14, 7  ;;  %p317_p6 = scmp.gt.s32.totalorder %s316_s11, 0  ;;  %342 = vst.msk [vmem:[#allocation2] sm:$0xff] (!%p652_p10), %vm341_vm0, %v861_v0 }
  0x2e   : > { %s1018_s9 = smov (!%p302_p4, %s298_s9), 3  ;;  %p304_p7 = scmp.lt.s32.totalorder %s301_s15, 1 }
  0x2f   : > { %s1020_s14 = smov (!%p291_p5, %s290_s14), 7  ;;  %s646_s16 = sshll.u32 %s1018_s9, 4 }
  0x30   : > { %s644_s17 = sshll.u32 %s1020_s14, 3  ;;  %s651_s18 = sshll.u32 %s334_s12, 3 }
  0x31   : > { %s947_s21 = scalar_lea.vmem %s1002_s2, %s644_s17  ;;  %s952_s24 = scalar_lea.vmem %s1005_s5, %s651_s18 }
  0x32   : > { %s1022_s15 = smov (!%p304_p7, %s301_s15), 1  ;;  %p320_p8 = scmp.lt.s32.totalorder %s315_s13, 3 }
  0x33   : > { %s318_s25 = scalar_select %p317_p6, %s841_s1, 1 }
  0x34   : > { %s645_s26 = sshll.u32 %s1022_s15, 3  ;;  %s1024_s13 = smov (!%p320_p8, %s315_s13), 3 }
  0x35   : > { %s308_s0 = sadd.s32 %s646_s16, %s645_s26  ;;  %s648_s8 = sshll.u32 %s318_s25, 4 }
  0x36   : > { %s647_s10 = sshll.u32 %s308_s0, 3  ;;  %p322_p9 = scmp.lt.s32.totalorder %s648_s8, 31 }
  0x37   : > { %s310_s12 = scalar_lea.vmem %s1003_s3, %s647_s10  ;;  %s649_s14 = sshll.u32 %s1024_s13, 5 }
  0x38   : > { %s1026_s8 = smov (!%p322_p9, %s648_s8), 31  ;;  %340 = sbr.rel (%p652_p10) target bundleno = 63 (0x3f), region = 36 }
  0x39   : > { %s325_s17 = sadd.s32 %s649_s14, %s1026_s8 }
  0x3a   : > { %s650_s19 = sshll.u32 %s325_s17, 3 }
  0x3b   : > { %s961_s22 = scalar_lea.vmem %s1004_s4, %s650_s19 }
  0x3f PF: > { %s343_s15 = sld [smem:[#allocation5 + %s845_s27]] }
  0x45   : > { %p653_p11 = scmp.le.s32.totalorder %s343_s15, 0 }
  0x46   : > { %v350_v1 = vld [vmem:[%s310_s12 + $0x8] sm:$0xff] (!%p653_p11)  ;;  %v352_v2 = vld [vmem:[%s310_s12 + $0x18] sm:$0xff] (!%p653_p11)  ;;  %v349_v3 = vld [vmem:[%s310_s12] sm:$0xff] (!%p653_p11)  ;;  %v862_v8 = vmov (!%p653_p11), 0.0   ;;  %v863_v9 = vmov (!%p653_p11), 0.0|0.0   ;;  %vm357_vm1 = vcmask (!%p653_p11), 261120  }
  0x47   : > { %347 = sbr.rel (%p653_p11) target bundleno = 538 (0x21a), region = 40  ;;  %v711_v4 = vpack.c.bf16 (!%p653_p11), %v352_v2, %v350_v1  ;;  %v351_v5 = vld [vmem:[%s310_s12 + $0x10] sm:$0xff] (!%p653_p11)  ;;  %v354_v6 = vld [vmem:[%s310_s12 + $0x28] sm:$0xff] (!%p653_p11)  ;;  %v356_v7 = vld [vmem:[%s310_s12 + $0x38] sm:$0xff] (!%p653_p11)  ;;  %425 = vmatprep.mubr.f32.mxu0 (!%p653_p11), %v862_v8  ;;  %719 = vmatprep.subr.bf16.mxu1 (!%p653_p11), %v863_v9  ;;  %vm864_vm2 = vmmov (!%p653_p11), 0  }
  0x48   : > { %v713_v10 = vpack.c.bf16 (!%p653_p11), %v351_v5, %v349_v3  ;;  %v715_v11 = vpack.c.bf16 (!%p653_p11), %v356_v7, %v354_v6  ;;  %v353_v12 = vld [vmem:[%s310_s12 + $0x20] sm:$0xff] (!%p653_p11)  ;;  %v355_v13 = vld [vmem:[%s310_s12 + $0x30] sm:$0xff] (!%p653_p11)  ;;  %v442_v17 = vld [vmem:[%s961_s22 + $0x8] sm:$0xff] (!%p653_p11)  ;;  %708 = vmatprep.mubr.msk.f32.mxu1 (!%p653_p11), %vm864_vm2, %v862_v8 }
  0x49   : > { %712 = vmatprep.subr.bf16.mxu0 (!%p653_p11), %v711_v4  ;;  %v717_v14 = vpack.c.bf16 (!%p653_p11), %v355_v13, %v353_v12  ;;  %v348_v15 = vld [vmem:[%s947_s21] sm:$0xff] (!%p653_p11)  ;;  %v443_v19 = vld [vmem:[%s961_s22 + $0x10] sm:$0xff] (!%p653_p11)  ;;  %v444_v20 = vld [vmem:[%s961_s22 + $0x18] sm:$0xff] (!%p653_p11) }
  0x4a   : > { %714 = vmatpush1.bf16.msra.mxu0 (!%p653_p11), %v713_v10  ;;  %v441_v16 = vld [vmem:[%s961_s22] sm:$0xff] (!%p653_p11)  ;;  %v723_v21 = vpack.c.bf16 (!%p653_p11), %v444_v20, %v443_v19  ;;  %v446_v23 = vld [vmem:[%s961_s22 + $0x28] sm:$0xff] (!%p653_p11)  ;;  %v447_v25 = vld [vmem:[%s961_s22 + $0x30] sm:$0xff] (!%p653_p11) }
  0x4b   : > { %716 = vmatprep.subr.bf16.mxu0 (!%p653_p11), %v715_v11  ;;  %v720_v18 = vpack.c.bf16 (!%p653_p11), %v442_v17, %v441_v16  ;;  %v445_v22 = vld [vmem:[%s961_s22 + $0x20] sm:$0xff] (!%p653_p11)  ;;  %v448_v26 = vld [vmem:[%s961_s22 + $0x38] sm:$0xff] (!%p653_p11)  ;;  %v450_v29 = vld [vmem:[%s961_s22 + $0x48] sm:$0xff] (!%p653_p11) }
  0x4c   : > { %v726_v24 = vpack.c.bf16 (!%p653_p11), %v446_v23, %v445_v22  ;;  %v729_v27 = vpack.c.bf16 (!%p653_p11), %v448_v26, %v447_v25  ;;  %v449_v28 = vld [vmem:[%s961_s22 + $0x40] sm:$0xff] (!%p653_p11)  ;;  %v451_v31 = vld [vmem:[%s961_s22 + $0x50] sm:$0xff] (!%p653_p11)  ;;  %v452_v32 = vld [vmem:[%s961_s22 + $0x58] sm:$0xff] (!%p653_p11) }
  0x4d   : > { %721 = vmatpush3.bf16.msra.mxu1 (!%p653_p11), %v720_v18  ;;  %v732_v30 = vpack.c.bf16 (!%p653_p11), %v450_v29, %v449_v28  ;;  %v735_v33 = vpack.c.bf16 (!%p653_p11), %v452_v32, %v451_v31  ;;  %v453_v34 = vld [vmem:[%s961_s22 + $0x60] sm:$0xff] (!%p653_p11)  ;;  %v454_v35 = vld [vmem:[%s961_s22 + $0x68] sm:$0xff] (!%p653_p11)  ;;  %v455_v37 = vld [vmem:[%s961_s22 + $0x70] sm:$0xff] (!%p653_p11) }
  0x4e   : > { %718 = vmatpush1.bf16.msra.mxu0 %v717_v14  ;;  %722 = vmatprep.subr.bf16.mxu1 %v863_v9  ;;  %v738_v36 = vpack.c.bf16 %v454_v35, %v453_v34  ;;  %v456_v38 = vld [vmem:[%s961_s22 + $0x78] sm:$0xff]  ;;  %v440_v48 = vld [vmem:[#allocation2] sm:$0xff] }
  0x4f   : > { %v741_v39 = vpack.c.bf16 %v456_v38, %v455_v37 }
  0x51   : > { %654 = vmatmul.mubr.msk.f32.vlgmr.msra.gmra.mrb[0].mxu0 %vm357_vm1, %v348_v15  ;;  %724 = vmatpush3.bf16.msra.mxu1 %v723_v21 }
  0x52   : > { %725 = vmatprep.subr.bf16.mxu1 %v863_v9 }
  0x55   : > { %727 = vmatpush3.bf16.msra.mxu1 %v726_v24 }
  0x56   : > { %728 = vmatprep.subr.bf16.mxu1 %v863_v9 }
  0x59   : > { %730 = vmatpush3.bf16.msra.mxu1 %v729_v27 }
  0x5a   : > { %731 = vmatprep.subr.bf16.mxu1 %v863_v9 }
  0x5d   : > { %733 = vmatpush3.bf16.msra.mxu1 %v732_v30 }
  0x5e   : > { %734 = vmatprep.subr.bf16.mxu1 %v863_v9 }
  0x61   : > { %736 = vmatpush3.bf16.msra.mxu1 %v735_v33 }
  0x62   : > { %737 = vmatprep.subr.bf16.mxu1 %v863_v9 }
  0x65   : > { %739 = vmatpush3.bf16.msra.mxu1 %v738_v36 }
  0x66   : > { %740 = vmatprep.subr.bf16.mxu1 %v863_v9 }
  0x69   : > { %742 = vmatpush3.bf16.msra.mxu1 %v741_v39 }
 0x124   : > { %v427_v40 = vpop.f32.mrb[0].mxu0 }
 0x125   : > { %v655_v41 = vmul.f32 -1.442695, %v427_v40  ;;  %v429_v42 = vpop.f32.mrb[1].mxu0 }
 0x127   : > { %789 = vpow2.f32 %v655_v41 }
 0x131   : > { %v790_v43 = vpop.eup %789 }
 0x132   : > { %v435_v44 = vadd.f32 1.0, %v790_v43 }
 0x134   : > { %791 = vrcp.f32 %v435_v44 }
 0x13e   : > { %v792_v45 = vpop.eup %791 }
 0x13f   : > { %v438_v46 = vmul.f32 %v792_v45, %v427_v40 }
 0x141   : > { %v439_v47 = vmul.f32 %v438_v46, %v429_v42 }
 0x143   : > { %709 = vmatmul.mubr.f32.vlgmr.msra.gmra.mrb[0].mxu1 %v439_v47 }
 0x216   : > { %v523_v49 = vpop.f32.mrb[0].mxu1 }
 0x217   : > { %v527_v50 = vadd.f32 %v523_v49, %v440_v48  ;;  %v710_v51 = vpop.f32.mrb[1].mxu1 }
 0x219   : > { %528 = vst.msk [vmem:[#allocation2] sm:$0xff] %vm357_vm1, %v527_v50 }
 0x21a PF: > { %p656_p12 = scmp.ne.s32.totalorder %s841_s1, 1 }
 0x21b   : > { %vm534_vm3 = vcmask (!%p656_p12), 261120  }
 0x21c   : > { %532 = sbr.rel (%p656_p12) target bundleno = 547 (0x223), region = 44 }
 0x220   : > { %v533_v52 = vld [vmem:[#allocation2] sm:$0xff] (!%p656_p12) }
 0x221   : > { %535 = vst.msk [vmem:[%s952_s24] sm:$0xff] (!%p656_p12), %vm534_vm3, %v533_v52 }
 0x223 PF: > { %s25_s30 = sadd.s32 1, %s857_s30   ;;  %s1007_s1 = smov %s849_s28 }
 0x224   : > { %p22_p13 = scmp.ge.s32.totalorder %s25_s30, 18   ;;  %s1008_s27 = smov %s853_s29 }
 0x225   : > { %s1009_s28 = smov %s1012_s6  ;;  %s1010_s29 = smov %s1016_s7 }
 0x226   :  { %24 = sbr.rel (!%p22_p13) target bundleno = 28 (0x1c), region = 80 }

</bundles_post_ra>
